<compile_context>
chip_gen: v7x
topology: tpu7x:2x2x1
jax: 0.10.0
libtpu: 0.0.40
codegen_flags: <defaults>
</compile_context>

<pallas_src>
import functools
import math

import numpy as np

import jax
import jax.numpy as jnp
from jax.experimental import pallas as pl
from jax.experimental.pallas import tpu as pltpu


def _nearest_matrix(out_size: int, in_size: int) -> np.ndarray:
    """Selection matrix matching torch F.interpolate(mode='nearest'),
    recompute_scale_factor=True: src = floor(dst * in_size / out_size)."""
    m = np.zeros((out_size, in_size), dtype=np.float64)
    for d in range(out_size):
        s = min((d * in_size) // out_size, in_size - 1)
        m[d, s] = 1.0
    return m


def _bilinear_matrix(out_size: int, in_size: int) -> np.ndarray:
    """Interpolation matrix matching torch bilinear resize (align_corners=False,
    half-pixel centers, no antialias)."""
    m = np.zeros((out_size, in_size), dtype=np.float64)
    scale = in_size / out_size
    for d in range(out_size):
        src = max((d + 0.5) * scale - 0.5, 0.0)
        i0 = min(int(math.floor(src)), in_size - 1)
        i1 = min(i0 + 1, in_size - 1)
        w1 = src - i0
        m[d, i0] += 1.0 - w1
        m[d, i1] += w1
    return m


@functools.lru_cache(maxsize=32)
def _build_operators(h_in, w_in, h_out, w_out, ratio):
    """Host-side fused per-axis operators (cached across calls)."""
    h_mid = max(int(math.floor(h_in * ratio)), 1)
    w_mid = max(int(math.floor(w_in * ratio)), 1)
    my = _bilinear_matrix(h_out, h_mid) @ _nearest_matrix(h_mid, h_in)  # (H_out, H_in)
    mx = _bilinear_matrix(w_out, w_mid) @ _nearest_matrix(w_mid, w_in)  # (W_out, W_in)
    return my, mx


@functools.lru_cache(maxsize=32)
def _kron_operator_bf16(h_in, w_in, h_out, w_out, ratio):
    """Device-resident bf16 Kronecker operator R^T, built & uploaded once.

    rt[h*W_in + w, p*W_out + q] = my[p, h] * mx[q, w]
    """
    my, mx = _build_operators(h_in, w_in, h_out, w_out, ratio)
    rt = np.kron(my, mx).T.astype(np.float32)  # (H_in*W_in, H_out*W_out)
    return jnp.asarray(rt, dtype=jnp.bfloat16)


def _resize_kernel(x_ref, rt_ref, o_ref):
    # Cast the input tile to bf16 in-kernel (free filler under the vld/MXU
    # slots; avoids a separate wrapper-side HBM cast pass), then one
    # lane-dense bf16 MXU matmul with f32 accumulation, stored directly in
    # the requested output dtype.
    x = x_ref[...].astype(jnp.bfloat16)
    o_ref[...] = jnp.dot(
        x, rt_ref[...], preferred_element_type=jnp.float32
    ).astype(o_ref.dtype)


def _pick_tile_rows(rows: int, tile_rows: int) -> int:
    """Sublane-aligned row tile giving >=2 (ideally >=8) grid steps so the DMA
    pipeline engages and v7x's second TensorCore gets work, while still
    amortizing the ~0.35 us per-step overhead with large tiles."""
    if rows <= 8:
        return rows
    target_steps = min(8, max(2, rows // 8))
    t = max(8, (rows // target_steps) // 8 * 8)
    return min(t, tile_rows, rows)


def resize_watermarked(img_wm, img, ratio, *, tile_rows=1024):
    """Pallas implementation of Resize.forward((img_wm, img)).

    img_wm: (N, C, H_in, W_in) float array (the watermarked image)
    img:    array whose last two dims define the final output size.
            NOTE: the torch reference passes (img.shape[-1], img.shape[-2]) --
            i.e. (W, H) order -- to transforms.Resize; we copy that faithfully
            (only equivalent to (H, W) for square images).
    ratio:  scale factor for the first (nearest) resize.
    """
    N, C, H_in, W_in = img_wm.shape
    H_out = int(img.shape[-1])
    W_out = int(img.shape[-2])

    rows = N * C
    in_cols = H_in * W_in
    out_cols = H_out * W_out

    # TODO(synk): for large spatial sizes (in_cols*out_cols beyond a few MiB)
    # switch to the separable two-matmul form (My @ X @ Mx^T via a VMEM
    # scratch) instead of materializing kron(My, Mx) -- the kron operator
    # scales quadratically and would exhaust v7x's 64 MiB VMEM first.
    rt = _kron_operator_bf16(H_in, W_in, H_out, W_out, float(ratio))

    # Pure reshape (no dtype cast): the bf16 cast happens per-tile inside the
    # kernel, so no standalone HBM read+write cast pass before the kernel.
    x2 = img_wm.reshape(rows, in_cols)

    tile_r = _pick_tile_rows(rows, tile_rows)
    grid = (pl.cdiv(rows, tile_r),)

    # Scoped-VMEM budget: double-buffered in/out tiles + resident bf16 operator
    # (v5e's scoped default is only 16 MiB); only override when pressing it.
    in_bytes = np.dtype(x2.dtype).itemsize
    out_bytes = np.dtype(img_wm.dtype).itemsize
    vmem_needed = (2 * tile_r * in_cols * in_bytes
                   + 2 * tile_r * out_cols * out_bytes
                   + 2 * in_cols * out_cols * 2)
    compiler_kwargs = dict(dimension_semantics=("parallel",))
    if vmem_needed > 12 * 1024 * 1024:
        compiler_kwargs["vmem_limit_bytes"] = int(vmem_needed * 3 // 2)

    out2 = pl.pallas_call(
        _resize_kernel,
        # Output emitted directly in the source dtype (no epilogue cast pass).
        out_shape=jax.ShapeDtypeStruct((rows, out_cols), img_wm.dtype),
        grid_spec=pltpu.PrefetchScalarGridSpec(
            num_scalar_prefetch=0,
            grid=grid,
            in_specs=[
                pl.BlockSpec((tile_r, in_cols), lambda i: (i, 0)),
                # Resize operator: constant block index -> stays resident in
                # VMEM across grid steps.
                pl.BlockSpec((in_cols, out_cols), lambda i: (0, 0)),
            ],
            out_specs=pl.BlockSpec((tile_r, out_cols), lambda i: (i, 0)),
        ),
        compiler_params=pltpu.CompilerParams(**compiler_kwargs),
    )(x2, rt)

    return out2.reshape(N, C, H_out, W_out)


if __name__ == "__main__":
    key = jax.random.PRNGKey(0)
    k1, k2 = jax.random.split(key)
    # Small NCHW batch consistent with the module's usage.
    img_wm = jax.random.uniform(k1, (2, 4, 16, 16), dtype=jnp.float32)
    img = jax.random.uniform(k2, (2, 4, 16, 16), dtype=jnp.float32)
    ratio = 0.5  # Resize(ratio=0.5)

    out = resize_watermarked(img_wm, img, ratio)
    out = jax.block_until_ready(out)

    # Reference: apply the same separable linear maps directly with numpy.
    N, C, H_in, W_in = img_wm.shape
    H_out, W_out = int(img.shape[-1]), int(img.shape[-2])
    my, mx = _build_operators(H_in, W_in, H_out, W_out, float(ratio))
    ref = np.einsum("ph,nchw,qw->ncpq", my, np.asarray(img_wm, np.float64), mx)

    assert out.shape == (N, C, H_out, W_out)
    assert out.dtype == img_wm.dtype
    np.testing.assert_allclose(
        np.asarray(out, np.float64), ref, atol=2e-2, rtol=2e-2
    )

    print("KERNEL_OK")
</pallas_src>

<mosaic_0001>
module attributes {stable_mosaic.version = 11 : i64} {
  func.func @_resize_kernel(%arg0: i32, %arg1: memref<8x256xf32, #tpu.memory_space<vmem>>, %arg2: memref<256x256xbf16, #tpu.memory_space<vmem>>, %arg3: memref<8x256xf32, #tpu.memory_space<vmem>>) attributes {dimension_semantics = [#tpu.dimension_semantics<parallel>], iteration_bounds = array<i64: 1>, scalar_prefetch = 0 : i64, scratch_operands = 0 : i64, tpu.core_type = #tpu.core_type<tc>, window_params = [{transform_indices = @transform_0, window_bounds = array<i64: 8, 256>}, {pipeline_mode = #tpu.pipeline_mode<synchronous>, transform_indices = @transform_1, window_bounds = array<i64: 256, 256>}, {transform_indices = @transform_2, window_bounds = array<i64: 8, 256>}]} {
    %c0 = arith.constant 0 : index
    %c0_0 = arith.constant 0 : index
    %0 = vector.load %arg1[%c0, %c0_0] : memref<8x256xf32, #tpu.memory_space<vmem>>, vector<8x256xf32>
    %1 = arith.truncf %0 : vector<8x256xf32> to vector<8x256xbf16>
    %c0_1 = arith.constant 0 : index
    %c0_2 = arith.constant 0 : index
    %2 = vector.load %arg2[%c0_1, %c0_2] : memref<256x256xbf16, #tpu.memory_space<vmem>>, vector<256x256xbf16>
    %cst = arith.constant dense<0.000000e+00> : vector<8x256xf32>
    %3 = tpu.matmul %1, %2, %cst {dimension_numbers = #tpu.dot_dimension_numbers<[1], [0], [0], [1], [0, 0, 1, 1], [], []>} : vector<8x256xbf16>, vector<256x256xbf16>, vector<8x256xf32> -> vector<8x256xf32>
    %c0_3 = arith.constant 0 : index
    %c0_4 = arith.constant 0 : index
    %4 = vector.load %arg3[%c0_3, %c0_4] : memref<8x256xf32, #tpu.memory_space<vmem>>, vector<8x256xf32>
    tpu.vector_store %arg3[%c0_3, %c0_4], %3 {strides = array<i32>} : memref<8x256xf32, #tpu.memory_space<vmem>>, vector<8x256xf32>,
    return
  }
  func.func @transform_0(%arg0: i32) -> (i32, i32) {
    %c0_i32 = arith.constant 0 : i32
    %c0_i32_0 = arith.constant 0 : i32
    return %arg0, %c0_i32 : i32, i32
  }
  func.func @transform_1(%arg0: i32) -> (i32, i32) {
    %c0_i32 = arith.constant 0 : i32
    %c0_i32_0 = arith.constant 0 : i32
    %c0_i32_1 = arith.constant 0 : i32
    return %c0_i32, %c0_i32_0 : i32, i32
  }
  func.func @transform_2(%arg0: i32) -> (i32, i32) {
    %c0_i32 = arith.constant 0 : i32
    %c0_i32_0 = arith.constant 0 : i32
    return %arg0, %c0_i32 : i32, i32
  }
}

</mosaic_0001>

<bundles_post_ra>
// kernel: tpu_custom_call.1
= control target key start
LH: loop header
LB: loop body
LE: loop exit
PB: predicated region body
PF: predicated region fallthrough
CT: control target
= control target key end

     0   :  { %7 = vsyncpa [#allocation3], 0  ;;  %s513_s0 = inlined_call_operand.hbm [shape: f32[8,256], index: 0, kind: input, shape index: {}]   ;;  %s514_s1 = inlined_call_operand.hbm [shape: bf16[256,256], index: 1, kind: input, shape index: {}]   ;;  %s515_s2 = inlined_call_operand.hbm [shape: f32[8,256], index: 2, kind: output, shape index: {}]  }
   0x1   :  { %8 = vsyncpa [#allocation6], 0 }
   0x2   :  { %9 = vsyncpa [#allocation4], 0  ;;  %s450_s9 = smov [#allocation2]   ;;  %s451_s11 = smov [#allocation5]  }
   0x3   :  { %s16_s10 = sshll.u32 %s450_s9, 4  ;;  %s25_s12 = sshll.u32 %s451_s11, 4  ;;  %s17_s10 = int_to_ptr.vmem [resolvable:$true] %s16_s10  ;;  %s470_s12 = int_to_ptr.vmem [resolvable:$true] %s25_s12 }
   0x4   :  { %s378_s15 = scalar_lea.hbm %s513_s0, 256 }
   0x5   :  { %p379_p0 = scmp.ne.s32.totalorder %s513_s0, %s378_s15  ;;  %p382_p1 = scmp.lt.u32.totalorder %s378_s15, %s513_s0 }
   0x7   :  { %p384_p2 = pnand %p382_p1, %p379_p0 }
   0x9   :  { %387 = shalt.err (!%p384_p2)
}
   0xa   :  { %s388_s20 = scalar_lea.vmem %s17_s10, 256  ;;  %p393_p4 = scmp.lt.s32.totalorder %s17_s10, %s17_s10 }
   0xb   :  { %p389_p3 = scmp.ne.s32.totalorder %s17_s10, %s388_s20  ;;  %p394_p5 = scmp.lt.s32.totalorder %s388_s20, %s388_s20 }
   0xd   :  { %p395_p6 = por %p394_p5, %p393_p4 }
   0xf   :  { %p396_p7 = pnand %p395_p6, %p389_p3 }
  0x11   :  { %399 = shalt.err (!%p396_p7)
}
  0x12   :  { %19 = dma.hbm_to_vmem [thread:$0]  %s513_s0, 256, %s17_s10, [#allocation3]  }
  0x13   :  { %s400_s25 = scalar_lea.hbm %s514_s1, 4096 }
  0x14   :  { %p401_p8 = scmp.ne.s32.totalorder %s514_s1, %s400_s25  ;;  %p404_p9 = scmp.lt.u32.totalorder %s400_s25, %s514_s1 }
  0x16   :  { %p406_p10 = pnand %p404_p9, %p401_p8 }
  0x18   :  { %409 = shalt.err (!%p406_p10)
}
  0x19   :  { %s410_s30 = scalar_lea.vmem %s470_s12, 4096  ;;  %p415_p12 = scmp.lt.s32.totalorder %s470_s12, %s470_s12 }
  0x1a   :  { %p411_p11 = scmp.ne.s32.totalorder %s470_s12, %s410_s30  ;;  %p416_p13 = scmp.lt.s32.totalorder %s410_s30, %s410_s30 }
  0x1c   :  { %p417_p0 = por %p416_p13, %p415_p12 }
  0x1e   :  { %p418_p1 = pnand %p417_p0, %p411_p11 }
  0x20   :  { %421 = shalt.err (!%p418_p1)
}
  0x21   :  { %s452_s0 = smov 128   ;;  %s453_s3 = smov 8  }
  0x22   :  { %31 = dma.hbm_to_vmem [thread:$0]  %s514_s1, 4096, %s470_s12, [#allocation6], %s452_s0, %s452_s0, %s453_s3  }
  0x23   :  { %444 = dma.done.wait [#allocation3], 256  }
  0x24   :  { %445 = vsyncadd [#allocation3], 4294967040 }
  0x25   :  { %446 = dma.done.wait [#allocation6], 4096  }
  0x26   :  { %447 = vsyncadd [#allocation6], 4294963200  ;;  %v330_v0 = vld [vmem:[#allocation5 + $0x4] ss:$8 sps:$4 sm:$0xff]   ;;  %v332_v1 = vld [vmem:[#allocation5] ss:$8 sps:$4 sm:$0xff]  }
  0x27   :  { %234 = vmatprep.subr.bf16.mxu0 %v330_v0  ;;  %v333_v2 = vld [vmem:[#allocation5 + $0x14] ss:$8 sps:$4 sm:$0xff]   ;;  %v335_v3 = vld [vmem:[#allocation5 + $0x10] ss:$8 sps:$4 sm:$0xff]   ;;  %v336_v4 = vld [vmem:[#allocation5 + $0x24] ss:$8 sps:$4 sm:$0xff]  }
  0x28   :  { %235 = vmatpush1.bf16.msra.mxu0 %v332_v1  ;;  %v338_v5 = vld [vmem:[#allocation5 + $0x20] ss:$8 sps:$4 sm:$0xff]   ;;  %v339_v6 = vld [vmem:[#allocation5 + $0x34] ss:$8 sps:$4 sm:$0xff]   ;;  %v341_v7 = vld [vmem:[#allocation5 + $0x30] ss:$8 sps:$4 sm:$0xff]  }
  0x29   :  { %236 = vmatprep.subr.bf16.mxu0 %v333_v2  ;;  %v342_v8 = vld [vmem:[#allocation5 + $0x44] ss:$8 sps:$4 sm:$0xff]   ;;  %v344_v9 = vld [vmem:[#allocation5 + $0x40] ss:$8 sps:$4 sm:$0xff]   ;;  %v345_v10 = vld [vmem:[#allocation5 + $0x54] ss:$8 sps:$4 sm:$0xff]  }
  0x2a   :  { %v347_v11 = vld [vmem:[#allocation5 + $0x50] ss:$8 sps:$4 sm:$0xff]   ;;  %v348_v12 = vld [vmem:[#allocation5 + $0x64] ss:$8 sps:$4 sm:$0xff]   ;;  %v350_v15 = vld [vmem:[#allocation5 + $0x60] ss:$8 sps:$4 sm:$0xff]  }
  0x2b   :  { %v39_v13 = vld [vmem:[#allocation2 + $0x8] sm:$0xff]  ;;  %v354_v18 = vld [vmem:[#allocation5 + $0x84] ss:$8 sps:$4 sm:$0xff]   ;;  %v356_v19 = vld [vmem:[#allocation5 + $0x80] ss:$8 sps:$4 sm:$0xff]   ;;  %s454_s1 = smov [#allocation7]  }
  0x2c   :  { %237 = vmatpush1.bf16.msra.mxu0 %v335_v3  ;;  %v41_v14 = vpack.c.bf16 %v39_v13, %v39_v13  ;;  %v351_v16 = vld [vmem:[#allocation5 + $0x74] ss:$8 sps:$4 sm:$0xff]   ;;  %v353_v17 = vld [vmem:[#allocation5 + $0x70] ss:$8 sps:$4 sm:$0xff]   ;;  %v360_v22 = vld [vmem:[#allocation5 + $0xa4] ss:$8 sps:$4 sm:$0xff]  }
  0x2d   :  { %238 = vmatprep.subr.bf16.mxu0 %v336_v4  ;;  %v357_v20 = vld [vmem:[#allocation5 + $0x94] ss:$8 sps:$4 sm:$0xff]   ;;  %v359_v21 = vld [vmem:[#allocation5 + $0x90] ss:$8 sps:$4 sm:$0xff]   ;;  %v362_v23 = vld [vmem:[#allocation5 + $0xa0] ss:$8 sps:$4 sm:$0xff]  }
  0x2e   :  { %266 = vmatprep.mubr.bf16.mxu0 %v41_v14  ;;  %v363_v24 = vld [vmem:[#allocation5 + $0xb4] ss:$8 sps:$4 sm:$0xff]   ;;  %v365_v25 = vld [vmem:[#allocation5 + $0xb0] ss:$8 sps:$4 sm:$0xff]   ;;  %v366_v26 = vld [vmem:[#allocation5 + $0xc4] ss:$8 sps:$4 sm:$0xff]  }
  0x2f   :  { %v368_v27 = vld [vmem:[#allocation5 + $0xc0] ss:$8 sps:$4 sm:$0xff]   ;;  %v369_v28 = vld [vmem:[#allocation5 + $0xd4] ss:$8 sps:$4 sm:$0xff]   ;;  %v371_v29 = vld [vmem:[#allocation5 + $0xd0] ss:$8 sps:$4 sm:$0xff]  }
  0x30   :  { %239 = vmatpush1.bf16.msra.mxu0 %v338_v5  ;;  %v372_v30 = vld [vmem:[#allocation5 + $0xe4] ss:$8 sps:$4 sm:$0xff]   ;;  %v374_v31 = vld [vmem:[#allocation5 + $0xe0] ss:$8 sps:$4 sm:$0xff]   ;;  %v375_v32 = vld [vmem:[#allocation5 + $0xf4] ss:$8 sps:$4 sm:$0xff]  }
  0x31   :  { %240 = vmatprep.subr.bf16.mxu0 %v339_v6  ;;  %v377_v33 = vld [vmem:[#allocation5 + $0xf0] ss:$8 sps:$4 sm:$0xff]   ;;  %s283_s6 = sshll.u32 %s454_s1, 4  ;;  %s284_s6 = int_to_ptr.vmem [resolvable:$true] %s283_s6 }
  0x32   :  { %v38_v34 = vld [vmem:[#allocation2] sm:$0xff]  ;;  %s422_s7 = scalar_lea.vmem %s284_s6, 256  ;;  %p427_p3 = scmp.lt.s32.totalorder %s284_s6, %s284_s6 }
  0x33   :  { %v40_v35 = vpack.c.bf16 %v38_v34, %v38_v34  ;;  %p423_p2 = scmp.ne.s32.totalorder %s284_s6, %s422_s7  ;;  %p428_p4 = scmp.lt.s32.totalorder %s422_s7, %s422_s7 }
  0x34   :  { %241 = vmatpush1.bf16.msra.mxu0 %v341_v7 }
  0x35   :  { %242 = vmatprep.subr.bf16.mxu0 %v342_v8  ;;  %p429_p5 = por %p428_p4, %p427_p3 }
  0x37   :  { %p430_p6 = pnand %p429_p5, %p423_p2 }
  0x38   :  { %243 = vmatpush1.bf16.msra.mxu0 %v344_v9 }
  0x39   :  { %244 = vmatprep.subr.bf16.mxu0 %v345_v10 }
  0x3c   :  { %245 = vmatpush1.bf16.msra.mxu0 %v347_v11 }
  0x3d   :  { %246 = vmatprep.subr.bf16.mxu0 %v348_v12 }
  0x40   :  { %247 = vmatpush1.bf16.msra.mxu0 %v350_v15 }
  0x41   :  { %248 = vmatprep.subr.bf16.mxu0 %v351_v16 }
  0x44   :  { %249 = vmatpush1.bf16.msra.mxu0 %v353_v17 }
  0x45   :  { %250 = vmatprep.subr.bf16.mxu0 %v354_v18 }
  0x48   :  { %251 = vmatpush1.bf16.msra.mxu0 %v356_v19 }
  0x49   :  { %252 = vmatprep.subr.bf16.mxu0 %v357_v20 }
  0x4c   :  { %253 = vmatpush1.bf16.msra.mxu0 %v359_v21 }
  0x4d   :  { %254 = vmatprep.subr.bf16.mxu0 %v360_v22 }
  0x50   :  { %255 = vmatpush1.bf16.msra.mxu0 %v362_v23 }
  0x51   :  { %256 = vmatprep.subr.bf16.mxu0 %v363_v24 }
  0x54   :  { %257 = vmatpush1.bf16.msra.mxu0 %v365_v25 }
  0x55   :  { %258 = vmatprep.subr.bf16.mxu0 %v366_v26 }
  0x58   :  { %259 = vmatpush1.bf16.msra.mxu0 %v368_v27 }
  0x59   :  { %260 = vmatprep.subr.bf16.mxu0 %v369_v28 }
  0x5c   :  { %261 = vmatpush1.bf16.msra.mxu0 %v371_v29 }
  0x5d   :  { %262 = vmatprep.subr.bf16.mxu0 %v372_v30 }
  0x60   :  { %263 = vmatpush1.bf16.msra.mxu0 %v374_v31 }
  0x61   :  { %264 = vmatprep.subr.bf16.mxu0 %v375_v32 }
  0x64   :  { %265 = vmatpush1.bf16.msra.mxu0 %v377_v33 }
  0x67   :  { %267 = vmatmul.mubr.bf16.vlgmr.msra.gmra.mrb[0].mxu0 %v40_v35 }
 0x13a   :  { %v268_v36 = vpop.f32.mrb[0].mxu0 }
 0x13b   :  { %275 = vst [vmem:[#allocation7] sm:$0xff] %v268_v36  ;;  %v270_v37 = vpop.f32.mrb[1].mxu0 }
 0x13c   :  { %276 = vst [vmem:[#allocation7 + $0x8] sm:$0xff] %v270_v37  ;;  %v272_v38 = vpop.f32.mrb[2].mxu0 }
 0x13d   :  { %v273_v39 = vpop.f32.mrb[3].mxu0 }
 0x13e   :  { %433 = shalt.err (!%p430_p6)
}
 0x13f   :  { %s434_s10 = scalar_lea.hbm %s515_s2, 256 }
 0x140   :  { %p435_p7 = scmp.ne.s32.totalorder %s515_s2, %s434_s10  ;;  %p438_p8 = scmp.lt.u32.totalorder %s434_s10, %s515_s2 }
 0x142   :  { %p440_p9 = pnand %p438_p8, %p435_p7 }
 0x144   :  { %443 = shalt.err (!%p440_p9)
}
 0x145   :  { %286 = dma.vmem_to_hbm [thread:$0]  %s284_s6, 256, %s515_s2, [#allocation4]  }
 0x146   :  { %448 = dma.done.wait [#allocation4], 256  }
 0x147   :  { %449 = vsyncadd [#allocation4], 4294967040 }
 0x148   :  { %290 = vsyncpa [#allocation3], 1 }
 0x149   :  { %291 = vsyncpa [#allocation6], 1 }
 0x14a   :  { %292 = vsyncpa [#allocation4], 1 }

</bundles_post_ra>
